<compile_context>
chip_gen: v5e
topology: v5e:2x2
jax: 0.10.0
libtpu: 0.0.40
codegen_flags: <defaults>
</compile_context>

<pallas_src>
import functools

import numpy as np
import jax
import jax.numpy as jnp
from jax.experimental import pallas as pl
from jax.experimental.pallas import tpu as pltpu


def _round_up(v, m):
    return ((v + m - 1) // m) * m


def _enc_conv_kernel(xf_ref, w_ref, b_ref, o_ref, *, wp):
    """Symmetry-fused 3x3 SAME conv for one batch element.

    xf_ref: (C_in, Lf)        flattened zero-padded image, row stride = wp = W + 2
    w_ref : (9, C_out, C_in)  per-tap weights, tap t = kh*3 + kw
    b_ref : (C_out, 1)        bias column
    o_ref : (C_out, L)        L = H * wp flat output; cols w >= W of each row are garbage
    """
    c_out, l = o_ref.shape
    c_in = xf_ref.shape[0]

    # Load the (tiny) flattened image once; every tap is a static lane-shifted
    # view of it (no in-kernel reshape, no gather).
    xflat = xf_ref[...]                                   # (C_in, Lf)

    # Bias becomes the accumulator init -> no separate epilogue add.
    acc = jnp.zeros((c_out, l), jnp.float32) + b_ref[...]

    for kh in range(3):                                   # statically unrolled 9 taps
        for kw in range(3):
            off = kh * wp + kw                            # static lane offset
            tap = xflat[:, off:off + l]                   # (C_in, L) shifted view
            acc = acc + jnp.dot(w_ref[kh * 3 + kw], tap,
                                preferred_element_type=jnp.float32)

    o_ref[...] = acc.astype(o_ref.dtype)


def conv3x3_same(x, weight, bias):
    """3x3 stride-1 SAME conv, NCHW, via in-kernel tap accumulation.

    x:      (N, C_in, H, W)
    weight: (C_out, C_in, 3, 3)
    bias:   (C_out,)
    """
    n, c_in, h, w = x.shape
    c_out = weight.shape[0]
    assert weight.shape == (c_out, c_in, 3, 3), weight.shape
    assert bias.shape == (c_out,), bias.shape

    wp = w + 2                         # padded row stride (lane stride of the flat image)
    l = h * wp                         # flat output width (2 garbage cols per row)
    max_off = 2 * wp + 2               # largest tap offset (kh=kw=2)
    lf = _round_up(max_off + l, 128)   # lane-pad the flattened input so all tap slices fit

    # Wrapper glue: zero-pad spatially, flatten (H+2, W+2) row-major, lane-pad.
    # This is ~1.2x the raw input (a few KB) — no 9x im2col expansion in HBM.
    xpad = jnp.pad(x, ((0, 0), (0, 0), (1, 1), (1, 1)))          # (N, C, H+2, W+2)
    xf = xpad.reshape(n, c_in, (h + 2) * wp)
    xf = jnp.pad(xf, ((0, 0), (0, 0), (0, lf - (h + 2) * wp)))   # (N, C, Lf)

    # Per-tap weight slabs: (kh, kw) -> tap index kh*3 + kw.  Bias as a column.
    # (Tiny; XLA constant-folds this when weights are parameters reused across calls.)
    w_taps = weight.transpose(2, 3, 0, 1).reshape(9, c_out, c_in)
    b_col = bias.reshape(c_out, 1).astype(jnp.float32)

    itemsize = jnp.dtype(x.dtype).itemsize
    flops = 2 * n * c_out * 9 * c_in * h * w
    bytes_accessed = (xf.size + w_taps.size) * itemsize + b_col.size * 4 \
        + n * c_out * l * itemsize

    kernel = functools.partial(_enc_conv_kernel, wp=wp)

    out = pl.pallas_call(
        kernel,
        out_shape=jax.ShapeDtypeStruct((n, c_out, l), x.dtype),
        grid_spec=pltpu.PrefetchScalarGridSpec(
            num_scalar_prefetch=0,
            grid=(n,),                                         # one batch element per step
            in_specs=[
                pl.BlockSpec((None, c_in, lf), lambda i: (i, 0, 0)),   # image (squeezed N)
                pl.BlockSpec((9, c_out, c_in), lambda i: (0, 0, 0)),   # weights (resident)
                pl.BlockSpec((c_out, 1), lambda i: (0, 0)),            # bias (resident)
            ],
            out_specs=pl.BlockSpec((None, c_out, l), lambda i: (i, 0, 0)),
        ),
        compiler_params=pltpu.CompilerParams(
            dimension_semantics=("parallel",)),                # v7x: batch split across 2 TCs
        cost_estimate=pl.CostEstimate(
            flops=flops, transcendentals=0, bytes_accessed=bytes_accessed),
    )(xf, w_taps, b_col)

    # Drop the 2 garbage columns per row (tiny XLA slice) and restore NCHW.
    return out.reshape(n, c_out, h, wp)[:, :, :, :w]


def encoder_forward(x, weight, bias):
    """Pallas port of Encoder.forward (NCHW).

    Rotation-equivariance of a stride-1, symmetric-SAME-padding 3x3 conv:
        rot90^-1( conv(rot90(x, +1), W) ) == conv(x, rot90(W, -1))
    so the z_h branch is computed by a spatially rotated copy of the weights
    stacked on the output-channel axis (-> C_out = 2C), in a single pass.
    """
    n, c, h, w = x.shape
    # Guards: the fusion is only valid for stride-1 symmetric SAME padding
    # (structural here) and is validated for square spatial dims.
    assert h == w, "rotation-fused z_h branch requires square spatial dims"

    w_rot = jnp.rot90(weight, -1, axes=(2, 3))                 # z_h weights
    w_both = jnp.concatenate([weight, w_rot], axis=0)          # (2C, C, 3, 3)
    b_both = jnp.concatenate([bias, bias], axis=0)             # (2C,)
    return conv3x3_same(x, w_both, b_both)                     # (N, 2C, H, W)


if __name__ == "__main__":
    key = jax.random.PRNGKey(0)
    k_x, k_w, k_b = jax.random.split(key, 3)

    N, C, H, W = 2, 4, 16, 16
    x = jax.random.normal(k_x, (N, C, H, W), dtype=jnp.float32)
    weight = 0.1 * jax.random.normal(k_w, (C, C, 3, 3), dtype=jnp.float32)
    bias = 0.1 * jax.random.normal(k_b, (C,), dtype=jnp.float32)

    out = jax.jit(encoder_forward)(x, weight, bias)
    out = jax.block_until_ready(out)
    assert out.shape == (N, 2 * C, H, W), out.shape

    # Reference: the literal module composition (rot90 -> conv -> rot90 back),
    # which also validates the rotated-weights fusion direction.
    def ref_conv(xx):
        y = jax.lax.conv_general_dilated(
            xx, weight, window_strides=(1, 1), padding="SAME",
            dimension_numbers=("NCHW", "OIHW", "NCHW"))
        return y + bias.reshape(1, C, 1, 1)

    z_w_ref = ref_conv(x)
    z_h_ref = jnp.rot90(ref_conv(jnp.rot90(x, 1, axes=(2, 3))), -1, axes=(2, 3))
    ref = jnp.concatenate([z_w_ref, z_h_ref], axis=1)

    np.testing.assert_allclose(np.asarray(out), np.asarray(ref),
                               rtol=1e-4, atol=1e-4)
    print("KERNEL_OK")
</pallas_src>

<mosaic_0001>
module attributes {stable_mosaic.version = 11 : i64} {
  func.func @_enc_conv_kernel(%arg0: i32, %arg1: memref<1x4x384xf32, #tpu.memory_space<vmem>>, %arg2: memref<9x8x4xf32, #tpu.memory_space<vmem>>, %arg3: memref<8x1xf32, #tpu.memory_space<vmem>>, %arg4: memref<1x8x288xf32, #tpu.memory_space<vmem>>) attributes {dimension_semantics = [#tpu.dimension_semantics<parallel>], iteration_bounds = array<i64: 2>, scalar_prefetch = 0 : i64, scratch_operands = 0 : i64, tpu.core_type = #tpu.core_type<tc>, window_params = [{transform_indices = @transform_0, window_bounds = array<i64: 1, 4, 384>}, {pipeline_mode = #tpu.pipeline_mode<synchronous>, transform_indices = @transform_1, window_bounds = array<i64: 9, 8, 4>}, {pipeline_mode = #tpu.pipeline_mode<synchronous>, transform_indices = @transform_2, window_bounds = array<i64: 8, 1>}, {transform_indices = @transform_3, window_bounds = array<i64: 1, 8, 288>}]} {
    %c0 = arith.constant 0 : index
    %c0_0 = arith.constant 0 : index
    %c0_1 = arith.constant 0 : index
    %0 = vector.load %arg1[%c0, %c0_0, %c0_1] : memref<1x4x384xf32, #tpu.memory_space<vmem>>, vector<1x4x384xf32>
    %1 = vector.shape_cast %0 : vector<1x4x384xf32> to vector<4x384xf32>
    %cst = arith.constant 0.000000e+00 : f32
    %2 = vector.broadcast %cst : f32 to vector<8x288xf32>
    %c0_2 = arith.constant 0 : index
    %c0_3 = arith.constant 0 : index
    %3 = vector.load %arg3[%c0_2, %c0_3] : memref<8x1xf32, #tpu.memory_space<vmem>>, vector<8x1xf32>
    %4 = vector.broadcast %3 : vector<8x1xf32> to vector<8x288xf32>
    %5 = arith.addf %2, %4 : vector<8x288xf32>
    %6 = vector.extract_strided_slice %1 {offsets = [0, 0], sizes = [4, 288], strides = [1, 1]} : vector<4x384xf32> to vector<4x288xf32>
    %c0_4 = arith.constant 0 : index
    %c0_5 = arith.constant 0 : index
    %c0_6 = arith.constant 0 : index
    %7 = vector.load %arg2[%c0_4, %c0_5, %c0_6] : memref<9x8x4xf32, #tpu.memory_space<vmem>>, vector<1x8x4xf32>
    %8 = vector.shape_cast %7 : vector<1x8x4xf32> to vector<8x4xf32>
    %cst_7 = arith.constant dense<0.000000e+00> : vector<8x288xf32>
    %9 = tpu.matmul %8, %6, %cst_7 {dimension_numbers = #tpu.dot_dimension_numbers<[1], [0], [0], [1], [0, 0, 1, 1], [], []>} : vector<8x4xf32>, vector<4x288xf32>, vector<8x288xf32> -> vector<8x288xf32>
    %10 = arith.addf %5, %9 : vector<8x288xf32>
    %11 = vector.extract_strided_slice %1 {offsets = [0, 1], sizes = [4, 288], strides = [1, 1]} : vector<4x384xf32> to vector<4x288xf32>
    %c1 = arith.constant 1 : index
    %c0_8 = arith.constant 0 : index
    %c0_9 = arith.constant 0 : index
    %12 = vector.load %arg2[%c1, %c0_8, %c0_9] : memref<9x8x4xf32, #tpu.memory_space<vmem>>, vector<1x8x4xf32>
    %13 = vector.shape_cast %12 : vector<1x8x4xf32> to vector<8x4xf32>
    %cst_10 = arith.constant dense<0.000000e+00> : vector<8x288xf32>
    %14 = tpu.matmul %13, %11, %cst_10 {dimension_numbers = #tpu.dot_dimension_numbers<[1], [0], [0], [1], [0, 0, 1, 1], [], []>} : vector<8x4xf32>, vector<4x288xf32>, vector<8x288xf32> -> vector<8x288xf32>
    %15 = arith.addf %10, %14 : vector<8x288xf32>
    %16 = vector.extract_strided_slice %1 {offsets = [0, 2], sizes = [4, 288], strides = [1, 1]} : vector<4x384xf32> to vector<4x288xf32>
    %c2 = arith.constant 2 : index
    %c0_11 = arith.constant 0 : index
    %c0_12 = arith.constant 0 : index
    %17 = vector.load %arg2[%c2, %c0_11, %c0_12] : memref<9x8x4xf32, #tpu.memory_space<vmem>>, vector<1x8x4xf32>
    %18 = vector.shape_cast %17 : vector<1x8x4xf32> to vector<8x4xf32>
    %cst_13 = arith.constant dense<0.000000e+00> : vector<8x288xf32>
    %19 = tpu.matmul %18, %16, %cst_13 {dimension_numbers = #tpu.dot_dimension_numbers<[1], [0], [0], [1], [0, 0, 1, 1], [], []>} : vector<8x4xf32>, vector<4x288xf32>, vector<8x288xf32> -> vector<8x288xf32>
    %20 = arith.addf %15, %19 : vector<8x288xf32>
    %21 = vector.extract_strided_slice %1 {offsets = [0, 18], sizes = [4, 288], strides = [1, 1]} : vector<4x384xf32> to vector<4x288xf32>
    %c3 = arith.constant 3 : index
    %c0_14 = arith.constant 0 : index
    %c0_15 = arith.constant 0 : index
    %22 = vector.load %arg2[%c3, %c0_14, %c0_15] : memref<9x8x4xf32, #tpu.memory_space<vmem>>, vector<1x8x4xf32>
    %23 = vector.shape_cast %22 : vector<1x8x4xf32> to vector<8x4xf32>
    %cst_16 = arith.constant dense<0.000000e+00> : vector<8x288xf32>
    %24 = tpu.matmul %23, %21, %cst_16 {dimension_numbers = #tpu.dot_dimension_numbers<[1], [0], [0], [1], [0, 0, 1, 1], [], []>} : vector<8x4xf32>, vector<4x288xf32>, vector<8x288xf32> -> vector<8x288xf32>
    %25 = arith.addf %20, %24 : vector<8x288xf32>
    %26 = vector.extract_strided_slice %1 {offsets = [0, 19], sizes = [4, 288], strides = [1, 1]} : vector<4x384xf32> to vector<4x288xf32>
    %c4 = arith.constant 4 : index
    %c0_17 = arith.constant 0 : index
    %c0_18 = arith.constant 0 : index
    %27 = vector.load %arg2[%c4, %c0_17, %c0_18] : memref<9x8x4xf32, #tpu.memory_space<vmem>>, vector<1x8x4xf32>
    %28 = vector.shape_cast %27 : vector<1x8x4xf32> to vector<8x4xf32>
    %cst_19 = arith.constant dense<0.000000e+00> : vector<8x288xf32>
    %29 = tpu.matmul %28, %26, %cst_19 {dimension_numbers = #tpu.dot_dimension_numbers<[1], [0], [0], [1], [0, 0, 1, 1], [], []>} : vector<8x4xf32>, vector<4x288xf32>, vector<8x288xf32> -> vector<8x288xf32>
    %30 = arith.addf %25, %29 : vector<8x288xf32>
    %31 = vector.extract_strided_slice %1 {offsets = [0, 20], sizes = [4, 288], strides = [1, 1]} : vector<4x384xf32> to vector<4x288xf32>
    %c5 = arith.constant 5 : index
    %c0_20 = arith.constant 0 : index
    %c0_21 = arith.constant 0 : index
    %32 = vector.load %arg2[%c5, %c0_20, %c0_21] : memref<9x8x4xf32, #tpu.memory_space<vmem>>, vector<1x8x4xf32>
    %33 = vector.shape_cast %32 : vector<1x8x4xf32> to vector<8x4xf32>
    %cst_22 = arith.constant dense<0.000000e+00> : vector<8x288xf32>
    %34 = tpu.matmul %33, %31, %cst_22 {dimension_numbers = #tpu.dot_dimension_numbers<[1], [0], [0], [1], [0, 0, 1, 1], [], []>} : vector<8x4xf32>, vector<4x288xf32>, vector<8x288xf32> -> vector<8x288xf32>
    %35 = arith.addf %30, %34 : vector<8x288xf32>
    %36 = vector.extract_strided_slice %1 {offsets = [0, 36], sizes = [4, 288], strides = [1, 1]} : vector<4x384xf32> to vector<4x288xf32>
    %c6 = arith.constant 6 : index
    %c0_23 = arith.constant 0 : index
    %c0_24 = arith.constant 0 : index
    %37 = vector.load %arg2[%c6, %c0_23, %c0_24] : memref<9x8x4xf32, #tpu.memory_space<vmem>>, vector<1x8x4xf32>
    %38 = vector.shape_cast %37 : vector<1x8x4xf32> to vector<8x4xf32>
    %cst_25 = arith.constant dense<0.000000e+00> : vector<8x288xf32>
    %39 = tpu.matmul %38, %36, %cst_25 {dimension_numbers = #tpu.dot_dimension_numbers<[1], [0], [0], [1], [0, 0, 1, 1], [], []>} : vector<8x4xf32>, vector<4x288xf32>, vector<8x288xf32> -> vector<8x288xf32>
    %40 = arith.addf %35, %39 : vector<8x288xf32>
    %41 = vector.extract_strided_slice %1 {offsets = [0, 37], sizes = [4, 288], strides = [1, 1]} : vector<4x384xf32> to vector<4x288xf32>
    %c7 = arith.constant 7 : index
    %c0_26 = arith.constant 0 : index
    %c0_27 = arith.constant 0 : index
    %42 = vector.load %arg2[%c7, %c0_26, %c0_27] : memref<9x8x4xf32, #tpu.memory_space<vmem>>, vector<1x8x4xf32>
    %43 = vector.shape_cast %42 : vector<1x8x4xf32> to vector<8x4xf32>
    %cst_28 = arith.constant dense<0.000000e+00> : vector<8x288xf32>
    %44 = tpu.matmul %43, %41, %cst_28 {dimension_numbers = #tpu.dot_dimension_numbers<[1], [0], [0], [1], [0, 0, 1, 1], [], []>} : vector<8x4xf32>, vector<4x288xf32>, vector<8x288xf32> -> vector<8x288xf32>
    %45 = arith.addf %40, %44 : vector<8x288xf32>
    %46 = vector.extract_strided_slice %1 {offsets = [0, 38], sizes = [4, 288], strides = [1, 1]} : vector<4x384xf32> to vector<4x288xf32>
    %c8 = arith.constant 8 : index
    %c0_29 = arith.constant 0 : index
    %c0_30 = arith.constant 0 : index
    %47 = vector.load %arg2[%c8, %c0_29, %c0_30] : memref<9x8x4xf32, #tpu.memory_space<vmem>>, vector<1x8x4xf32>
    %48 = vector.shape_cast %47 : vector<1x8x4xf32> to vector<8x4xf32>
    %cst_31 = arith.constant dense<0.000000e+00> : vector<8x288xf32>
    %49 = tpu.matmul %48, %46, %cst_31 {dimension_numbers = #tpu.dot_dimension_numbers<[1], [0], [0], [1], [0, 0, 1, 1], [], []>} : vector<8x4xf32>, vector<4x288xf32>, vector<8x288xf32> -> vector<8x288xf32>
    %50 = arith.addf %45, %49 : vector<8x288xf32>
    %c0_32 = arith.constant 0 : index
    %c0_33 = arith.constant 0 : index
    %c0_34 = arith.constant 0 : index
    %51 = vector.load %arg4[%c0_32, %c0_33, %c0_34] : memref<1x8x288xf32, #tpu.memory_space<vmem>>, vector<1x8x288xf32>
    %52 = vector.shape_cast %51 : vector<1x8x288xf32> to vector<8x288xf32>
    %53 = vector.shape_cast %50 : vector<8x288xf32> to vector<1x8x288xf32>
    tpu.vector_store %arg4[%c0_32, %c0_33, %c0_34], %53 {strides = array<i32>} : memref<1x8x288xf32, #tpu.memory_space<vmem>>, vector<1x8x288xf32>,
    return
  }
  func.func @transform_0(%arg0: i32) -> (i32, i32, i32) {
    %c0_i32 = arith.constant 0 : i32
    %c0_i32_0 = arith.constant 0 : i32
    %c0_i32_1 = arith.constant 0 : i32
    return %arg0, %c0_i32, %c0_i32_0 : i32, i32, i32
  }
  func.func @transform_1(%arg0: i32) -> (i32, i32, i32) {
    %c0_i32 = arith.constant 0 : i32
    %c0_i32_0 = arith.constant 0 : i32
    %c0_i32_1 = arith.constant 0 : i32
    %c0_i32_2 = arith.constant 0 : i32
    return %c0_i32, %c0_i32_0, %c0_i32_1 : i32, i32, i32
  }
  func.func @transform_2(%arg0: i32) -> (i32, i32) {
    %c0_i32 = arith.constant 0 : i32
    %c0_i32_0 = arith.constant 0 : i32
    %c0_i32_1 = arith.constant 0 : i32
    return %c0_i32, %c0_i32_0 : i32, i32
  }
  func.func @transform_3(%arg0: i32) -> (i32, i32, i32) {
    %c0_i32 = arith.constant 0 : i32
    %c0_i32_0 = arith.constant 0 : i32
    %c0_i32_1 = arith.constant 0 : i32
    return %arg0, %c0_i32, %c0_i32_0 : i32, i32, i32
  }
}

</mosaic_0001>

<bundles_post_ra>
// kernel: encoder_forward.1
= control target key start
LH: loop header
LB: loop body
LE: loop exit
PB: predicated region body
PF: predicated region fallthrough
CT: control target
= control target key end

     0   :  { %s1162_s12 = smov 0   ;;  %s1306_s0 = inlined_call_operand.vmem [shape: f32[2,4,384], index: 0, kind: input, shape index: {}]   ;;  %s1307_s1 = inlined_call_operand.vmem [shape: f32[9,8,4], index: 1, kind: input, shape index: {}]   ;;  %s1308_s2 = inlined_call_operand.vmem [shape: f32[8,1], index: 2, kind: input, shape index: {}]   ;;  %s1309_s3 = inlined_call_operand.vmem [shape: f32[2,8,288], index: 3, kind: output, shape index: {}]  }
   0x1 LB: > { %s1034_s13 = sadd.s32 4294967295, %s1131_s12   ;;  %p1038_p0 = scmp.ge.s32.totalorder %s1131_s12, 1  ;;  %s1131_s12 = sphi %s1162_s12, %s13_s12  }
   0x2   : > { %p137_p1 = scmp.lt.s32.totalorder %s1131_s12, 3 }
   0x4   : > { %p138_p2 = pnand %p1038_p0, %p137_p1 }
   0x5   : > { %p161_p3 = scmp.lt.s32.totalorder (!%p138_p2), %s1034_s13, 1  ;;  %s1133_s18 = smov (!%p138_p2), 127  }
   0x6   : > { %141 = sbr.rel (%p138_p2) target bundleno = 348 (0x15c), region = 32  ;;  %s1134_s19 = smov (!%p138_p2), 126  }
   0x7   : > { %s1135_s20 = smov (!%p138_p2), 110   ;;  %s1136_s21 = smov (!%p138_p2), 109  }
   0x8   : > { %s1137_s22 = smov (!%p138_p2), 108   ;;  %s1138_s23 = smov (!%p138_p2), 92  }
   0x9   : > { %s1139_s24 = smov (!%p138_p2), 91   ;;  %s1140_s25 = smov (!%p138_p2), 90  }
   0xb   : > { %s1311_s13 = smov (!%p161_p3, %s1034_s13), 1  ;;  %vm193_vm0 = vcmask 1043456   ;;  %v180_v30 = vld [vmem:[%s1307_s1] sm:$0xff]  ;;  %vm189_vm1 = vcmask 31744   ;;  %v1047_v31 = vld [vmem:[%s1307_s1 + $0x8] sm:$0xff]  ;;  %v1141_v34 = vmov 0  }
   0xc   : > { %s1105_s14 = smul.u32 12, %s1311_s13  ;;  %1124 = vset.pattern.permute.xlu0 %v1141_v34  ;;  %v173_v35 = vld [vmem:[%s1308_s2] sm:$0xff]  ;;  %vm277_vm2 = vcmask 1039360   ;;  %vm366_vm3 = vcmask 1031168   ;;  %vm455_vm4 = vcmask 900096   ;;  %v1054_v44 = vld [vmem:[%s1307_s1 + $0x10] sm:$0xff] }
   0xd   : > { %v1061_v48 = vld [vmem:[%s1307_s1 + $0x18] sm:$0xff]  ;;  %vm544_vm5 = vcmask 891904   ;;  %v1068_v54 = vld [vmem:[%s1307_s1 + $0x20] sm:$0xff]  ;;  %vm633_vm6 = vcmask 883712   ;;  %vm722_vm7 = vcmask 752640   ;;  %v1075_v60 = vld [vmem:[%s1307_s1 + $0x28] sm:$0xff] }
   0xe   : > { %s165_s17 = scalar_lea.vmem %s1306_s0, %s1105_s14  ;;  %v1082_v63 = vld [vmem:[%s1307_s1 + $0x30] sm:$0xff]  ;;  %vm811_vm8 = vcmask 744448   ;;  %vm900_vm9 = vcmask 736256   ;;  %vm977_vm10 = vcmask 261120  }
   0xf   : > { %v1176_v0 = vld [vmem:[%s165_s17] sm:$0xff]  ;;  %v1178_v1 = vld [vmem:[%s165_s17 + $0x8] sm:$0xf] }
  0x10   : > { %183 = vst [vmem:[#allocation1] ss:$2 sm:$0xff] %v1176_v0 }
  0x11   : > { %185 = vst [vmem:[#allocation1 + $0x10] ss:$2 sm:$0xff] %v1178_v1 }
  0x17   : > { %v1182_v2 = vld.sshfl [vmem:[#allocation1] sm:$0xff pattern:$0x75316420]  ;;  %v1184_v3 = vld.sshfl [vmem:[#allocation1 + $0x8] sm:$0xff pattern:$0x75316420] }
  0x18   : > { %265 = vst [vmem:[#allocation1] ss:$2 sm:$0xff] %v1176_v0  ;;  %v1187_v4 = vld.sshfl [vmem:[#allocation1 + $0x10] sm:$0xff pattern:$0x75316420]  ;;  %1043 = vmatpush.msk.msra.mxu1 %vm193_vm0, %v1184_v3  ;;  %1041 = vmatpush.msk.msra.mxu0 %vm193_vm0, %v1182_v2 }
  0x19   : > { %267 = vst [vmem:[#allocation1 + $0x10] ss:$2 sm:$0xff] %v1178_v1  ;;  %1045 = vmatpush.msk.msra.mxu2 %vm193_vm0, %v1187_v4  ;;  %1044 = vmatmul.msk.f32.vlgmr.msra.gmra.mxu1 %vm189_vm1, %v180_v30 }
  0x1a   : > { %1046 = vmatmul.msk.f32.vlgmr.msra.gmra.mxu2 %vm189_vm1, %v180_v30  ;;  %1042 = vmatmul.msk.f32.vlgmr.msra.gmra.mxu0 %vm189_vm1, %v180_v30 }
  0x1f   : > { %v268_v5 = vld.sshfl [vmem:[#allocation1] sm:$0xff pattern:$0x75316420]  ;;  %v269_v6 = vld.sshfl [vmem:[#allocation1 + $0x8] sm:$0xff pattern:$0x75316420] }
  0x20   : > { %271 = vrot.lane.b32.xlu0 %v268_v5, %s1133_s18  ;;  %354 = vst [vmem:[#allocation1] ss:$2 sm:$0xff] %v1176_v0  ;;  %v270_v7 = vld.sshfl [vmem:[#allocation1 + $0x10] sm:$0xff pattern:$0x75316420] }
  0x21   : > { %356 = vst [vmem:[#allocation1 + $0x10] ss:$2 sm:$0xff] %v1178_v1  ;;  %275 = vrot.lane.b32.xlu2 %v270_v7, %s1133_s18  ;;  %v1089_v7 = vld [vmem:[%s1307_s1 + $0x38] sm:$0xff] }
  0x27   : > { %v357_v8 = vld.sshfl [vmem:[#allocation1] sm:$0xff pattern:$0x75316420]  ;;  %v358_v9 = vld.sshfl [vmem:[#allocation1 + $0x8] sm:$0xff pattern:$0x75316420] }
  0x28   : > { %273 = vrot.lane.b32.xlu0 %v269_v6, %s1133_s18  ;;  %360 = vrot.lane.b32.xlu1 %v357_v8, %s1134_s19  ;;  %443 = vst [vmem:[#allocation1] ss:$2 sm:$0xff] %v1176_v0  ;;  %v359_v10 = vld.sshfl [vmem:[#allocation1 + $0x10] sm:$0xff pattern:$0x75316420] }
  0x29   : > { %445 = vst [vmem:[#allocation1 + $0x10] ss:$2 sm:$0xff] %v1178_v1  ;;  %364 = vrot.lane.b32.xlu2 %v359_v10, %s1134_s19 }
  0x2f   : > { %v447_v11 = vld.sshfl [vmem:[#allocation1 + $0x8] sm:$0xff pattern:$0x75316420]  ;;  %v446_v12 = vld.sshfl [vmem:[#allocation1] sm:$0xff pattern:$0x75316420] }
  0x30   : > { %362 = vrot.lane.b32.xlu1 %v358_v9, %s1134_s19  ;;  %451 = vrot.lane.b32.xlu0 %v447_v11, %s1135_s20  ;;  %532 = vst [vmem:[#allocation1] ss:$2 sm:$0xff] %v1176_v0  ;;  %v448_v13 = vld.sshfl [vmem:[#allocation1 + $0x10] sm:$0xff pattern:$0x75316420] }
  0x31   : > { %534 = vst [vmem:[#allocation1 + $0x10] ss:$2 sm:$0xff] %v1178_v1  ;;  %449 = vrot.lane.b32.xlu2 %v446_v12, %s1135_s20 }
  0x37   : > { %v536_v14 = vld.sshfl [vmem:[#allocation1 + $0x8] sm:$0xff pattern:$0x75316420]  ;;  %v535_v15 = vld.sshfl [vmem:[#allocation1] sm:$0xff pattern:$0x75316420] }
  0x38   : > { %453 = vrot.lane.b32.xlu1 %v448_v13, %s1135_s20  ;;  %v537_v16 = vld.sshfl [vmem:[#allocation1 + $0x10] sm:$0xff pattern:$0x75316420]  ;;  %621 = vst [vmem:[#allocation1] ss:$2 sm:$0xff] %v1176_v0  ;;  %v1096_v13 = vld [vmem:[%s1307_s1 + $0x40] sm:$0xff] }
  0x39   : > { %623 = vst [vmem:[#allocation1 + $0x10] ss:$2 sm:$0xff] %v1178_v1  ;;  %542 = vrot.lane.b32.xlu0 %v537_v16, %s1136_s21  ;;  %540 = vrot.lane.b32.xlu2 %v536_v14, %s1136_s21 }
  0x3f   : > { %v624_v17 = vld.sshfl [vmem:[#allocation1] sm:$0xff pattern:$0x75316420]  ;;  %v625_v18 = vld.sshfl [vmem:[#allocation1 + $0x8] sm:$0xff pattern:$0x75316420] }
  0x40   : > { %538 = vrot.lane.b32.xlu1 %v535_v15, %s1136_s21  ;;  %710 = vst [vmem:[#allocation1] ss:$2 sm:$0xff] %v1176_v0  ;;  %v626_v19 = vld.sshfl [vmem:[#allocation1 + $0x10] sm:$0xff pattern:$0x75316420]  ;;  %s1106_s21 = smul.u32 24, %s1311_s13 }
  0x41   : > { %627 = vrot.lane.b32.xlu0 %v624_v17, %s1137_s22  ;;  %712 = vst [vmem:[#allocation1 + $0x10] ss:$2 sm:$0xff] %v1178_v1 }
  0x47   : > { %v714_v20 = vld.sshfl [vmem:[#allocation1 + $0x8] sm:$0xff pattern:$0x75316420]  ;;  %v713_v21 = vld.sshfl [vmem:[#allocation1] sm:$0xff pattern:$0x75316420] }
  0x48   : > { %629 = vrot.lane.b32.xlu1 %v625_v18, %s1137_s22  ;;  %799 = vst [vmem:[#allocation1] ss:$2 sm:$0xff] %v1176_v0  ;;  %v715_v22 = vld.sshfl [vmem:[#allocation1 + $0x10] sm:$0xff pattern:$0x75316420]  ;;  %716 = vrot.lane.b32.xlu2 %v713_v21, %s1138_s23 }
  0x49   : > { %718 = vrot.lane.b32.xlu0 %v714_v20, %s1138_s23  ;;  %801 = vst [vmem:[#allocation1 + $0x10] ss:$2 sm:$0xff] %v1178_v1 }
  0x4f   : > { %v803_v23 = vld.sshfl [vmem:[#allocation1 + $0x8] sm:$0xff pattern:$0x75316420]  ;;  %v802_v24 = vld.sshfl [vmem:[#allocation1] sm:$0xff pattern:$0x75316420] }
  0x50   : > { %631 = vrot.lane.b32.xlu1 %v626_v19, %s1137_s22  ;;  %888 = vst [vmem:[#allocation1] ss:$2 sm:$0xff] %v1176_v0  ;;  %v804_v25 = vld.sshfl [vmem:[#allocation1 + $0x10] sm:$0xff pattern:$0x75316420]  ;;  %720 = vrot.lane.b32.xlu2 %v715_v22, %s1138_s23 }
  0x51   : > { %807 = vrot.lane.b32.xlu0 %v803_v23, %s1139_s24  ;;  %890 = vst [vmem:[#allocation1 + $0x10] ss:$2 sm:$0xff] %v1178_v1 }
  0x57   : > { %v891_v27 = vld.sshfl [vmem:[#allocation1] sm:$0xff pattern:$0x75316420]  ;;  %v892_v28 = vld.sshfl [vmem:[#allocation1 + $0x8] sm:$0xff pattern:$0x75316420] }
  0x58   : > { %809 = vrot.lane.b32.xlu1 %v804_v25, %s1139_s24  ;;  %v893_v26 = vld.sshfl [vmem:[#allocation1 + $0x10] sm:$0xff pattern:$0x75316420]  ;;  %805 = vrot.lane.b32.xlu2 %v802_v24, %s1139_s24  ;;  %s170_s24 = scalar_lea.vmem %s1309_s3, %s1106_s21 }
  0x59   : > { %898 = vrot.lane.b32.xlu0 %v893_v26, %s1140_s25 }
  0x60   : > { %894 = vrot.lane.b32.xlu1 %v891_v27, %s1140_s25  ;;  %896 = vrot.lane.b32.xlu2 %v892_v28, %s1140_s25 }
  0x61   : > { %176 = vperm.xlu0 %1124, %v173_v35  }
  0x7b   : > { %v276_v29 = vpop.permute.xlu2 %275 }
  0x7c   : > { %1052 = vmatpush.msk.msrb.mxu1 %vm193_vm0, %v276_v29 }
  0x7d   : > { %1053 = vmatmul.msk.f32.vlgmr.msrb.gmra.mxu1 %vm189_vm1, %v1047_v31 }
  0x83   : > { %v365_v32 = vpop.permute.xlu2 %364 }
  0x8b   : > { %v450_v36 = vpop.permute.xlu2 %449 }
  0x92   : > { %v272_v33 = vpop.permute.xlu0 %271 }
  0x93   : > { %v541_v41 = vpop.permute.xlu2 %540 }
  0x96   : > { %v237_v16 = vpop.f32.mrf.mxu1 }
  0x97   : > { %v217_v17 = vpop.f32.mrf.mxu0 }
  0x9a   : > { %v274_v37 = vpop.permute.xlu0 %273  ;;  %v361_v38 = vpop.permute.xlu1 %360 }
  0x9b   : > { %v278_v39 = vsel %vm277_vm2, %v272_v33, %v274_v37  ;;  %v279_v40 = vsel %vm277_vm2, %v274_v37, %v276_v29 }
  0x9c   : > { %1048 = vmatpush.msk.msra.mxu3 %vm193_vm0, %v278_v39  ;;  %1050 = vmatpush.msk.msrb.mxu0 %vm193_vm0, %v279_v40 }
  0x9d   : > { %1049 = vmatmul.msk.f32.vlgmr.msra.gmra.mxu3 %vm189_vm1, %v1047_v31  ;;  %1051 = vmatmul.msk.f32.vlgmr.msrb.gmra.mxu0 %vm189_vm1, %v1047_v31  ;;  %v257_v18 = vpop.f32.mrf.mxu2 }
  0x9e   : > { %1059 = vmatpush.msk.msra.mxu0 %vm193_vm0, %v365_v32 }
  0xa2   : > { %v363_v42 = vpop.permute.xlu1 %362  ;;  %v452_v43 = vpop.permute.xlu0 %451 }
  0xa3   : > { %v367_v45 = vsel %vm366_vm3, %v361_v38, %v363_v42  ;;  %v368_v46 = vsel %vm366_vm3, %v363_v42, %v365_v32  ;;  %v456_v47 = vsel %vm455_vm4, %v450_v36, %v452_v43  ;;  %v717_v52 = vpop.permute.xlu2 %716 }
  0xa4   : > { %1055 = vmatpush.msk.msrb.mxu2 %vm193_vm0, %v367_v45  ;;  %1057 = vmatpush.msk.msrb.mxu3 %vm193_vm0, %v368_v46 }
  0xa5   : > { %1056 = vmatmul.msk.f32.vlgmr.msrb.gmra.mxu2 %vm189_vm1, %v1054_v44  ;;  %1058 = vmatmul.msk.f32.vlgmr.msrb.gmra.mxu3 %vm189_vm1, %v1054_v44 }
  0xa6   : > { %1062 = vmatpush.msk.msra.mxu1 %vm193_vm0, %v456_v47  ;;  %1060 = vmatmul.msk.f32.vlgmr.msra.gmra.mxu0 %vm189_vm1, %v1054_v44 }
  0xa7   : > { %1063 = vmatmul.msk.f32.vlgmr.msra.gmra.mxu1 %vm189_vm1, %v1061_v48 }
  0xaa   : > { %v454_v49 = vpop.permute.xlu1 %453 }
  0xab   : > { %v457_v50 = vsel %vm455_vm4, %v452_v43, %v454_v49  ;;  %1066 = vmatpush.msk.msra.mxu3 %vm193_vm0, %v454_v49  ;;  %v543_v51 = vpop.permute.xlu0 %542  ;;  %v721_v58 = vpop.permute.xlu2 %720 }
  0xac   : > { %1064 = vmatpush.msk.msra.mxu2 %vm193_vm0, %v457_v50  ;;  %v546_v53 = vsel %vm544_vm5, %v541_v41, %v543_v51 }
  0xad   : > { %1065 = vmatmul.msk.f32.vlgmr.msra.gmra.mxu2 %vm189_vm1, %v1061_v48  ;;  %1067 = vmatmul.msk.f32.vlgmr.msra.gmra.mxu3 %vm189_vm1, %v1061_v48 }
  0xae   : > { %1073 = vmatpush.msk.msrb.mxu2 %vm193_vm0, %v543_v51  ;;  %1071 = vmatpush.msk.msrb.mxu1 %vm193_vm0, %v546_v53 }
  0xaf   : > { %1072 = vmatmul.msk.f32.vlgmr.msrb.gmra.mxu1 %vm189_vm1, %v1068_v54 }
  0xb2   : > { %v539_v55 = vpop.permute.xlu1 %538 }
  0xb3   : > { %v545_v56 = vsel %vm544_vm5, %v539_v55, %v541_v41  ;;  %v628_v57 = vpop.permute.xlu0 %627  ;;  %v806_v2 = vpop.permute.xlu2 %805 }
  0xb4   : > { %1069 = vmatpush.msk.msrb.mxu0 %vm193_vm0, %v545_v56 }
  0xb5   : > { %1074 = vmatmul.msk.f32.vlgmr.msrb.gmra.mxu2 %vm189_vm1, %v1068_v54  ;;  %1070 = vmatmul.msk.f32.vlgmr.msrb.gmra.mxu0 %vm189_vm1, %v1068_v54 }
  0xba   : > { %v630_v59 = vpop.permute.xlu1 %629 }
  0xbb   : > { %v634_v61 = vsel %vm633_vm6, %v628_v57, %v630_v59  ;;  %v719_v62 = vpop.permute.xlu0 %718  ;;  %v897_v8 = vpop.permute.xlu2 %896 }
  0xbc   : > { %1076 = vmatpush.msk.msrb.mxu3 %vm193_vm0, %v634_v61  ;;  %v723_v0 = vsel %vm722_vm7, %v717_v52, %v719_v62  ;;  %v724_v1 = vsel %vm722_vm7, %v719_v62, %v721_v58 }
  0xbd   : > { %1077 = vmatmul.msk.f32.vlgmr.msrb.gmra.mxu3 %vm189_vm1, %v1075_v60  ;;  %1083 = vmatpush.msk.msra.mxu2 %vm193_vm0, %v723_v0 }
  0xbe   : > { %1084 = vmatmul.msk.f32.vlgmr.msra.gmra.mxu2 %vm189_vm1, %v1082_v63  ;;  %1085 = vmatpush.msk.msra.mxu3 %vm193_vm0, %v724_v1 }
  0xc2   : > { %v632_v3 = vpop.permute.xlu1 %631 }
  0xc3   : > { %v635_v4 = vsel %vm633_vm6, %v630_v59, %v632_v3  ;;  %1080 = vmatpush.msk.msra.mxu1 %vm193_vm0, %v632_v3  ;;  %v808_v5 = vpop.permute.xlu0 %807 }
  0xc4   : > { %1078 = vmatpush.msk.msra.mxu0 %vm193_vm0, %v635_v4  ;;  %1081 = vmatmul.msk.f32.vlgmr.msra.gmra.mxu1 %vm189_vm1, %v1075_v60  ;;  %v812_v6 = vsel %vm811_vm8, %v806_v2, %v808_v5 }
  0xc5   : > { %1079 = vmatmul.msk.f32.vlgmr.msra.gmra.mxu0 %vm189_vm1, %v1075_v60  ;;  %1086 = vmatmul.msk.f32.vlgmr.msra.gmra.mxu3 %vm189_vm1, %v1082_v63 }
  0xc6   : > { %1087 = vmatpush.msk.msrb.mxu0 %vm193_vm0, %v721_v58  ;;  %1090 = vmatpush.msk.msrb.mxu1 %vm193_vm0, %v812_v6 }
  0xca   : > { %v810_v9 = vpop.permute.xlu1 %809 }
  0xcb   : > { %v813_v10 = vsel %vm811_vm8, %v808_v5, %v810_v9  ;;  %1094 = vmatpush.msk.msrb.mxu3 %vm193_vm0, %v810_v9  ;;  %v899_v11 = vpop.permute.xlu0 %898 }
  0xcc   : > { %1091 = vmatmul.msk.f32.vlgmr.msrb.gmra.mxu1 %vm189_vm1, %v1089_v7  ;;  %1092 = vmatpush.msk.msrb.mxu2 %vm193_vm0, %v813_v10  ;;  %v902_v12 = vsel %vm900_vm9, %v897_v8, %v899_v11 }
  0xcd   : > { %1088 = vmatmul.msk.f32.vlgmr.msrb.gmra.mxu0 %vm189_vm1, %v1082_v63  ;;  %1093 = vmatmul.msk.f32.vlgmr.msrb.gmra.mxu2 %vm189_vm1, %v1089_v7 }
  0xce   : > { %1095 = vmatmul.msk.f32.vlgmr.msrb.gmra.mxu3 %vm189_vm1, %v1089_v7  ;;  %1099 = vmatpush.msk.msra.mxu1 %vm193_vm0, %v902_v12 }
  0xcf   : > { %1101 = vmatpush.msk.msra.mxu2 %vm193_vm0, %v899_v11 }
  0xd2   : > { %v895_v14 = vpop.permute.xlu1 %894 }
  0xd3   : > { %v901_v15 = vsel %vm900_vm9, %v895_v14, %v897_v8  ;;  %v177_v27 = vpop.permute.xlu0 %176 }
  0xd4   : > { %1097 = vmatpush.msk.msra.mxu0 %vm193_vm0, %v901_v15  ;;  %1100 = vmatmul.msk.f32.vlgmr.msra.gmra.mxu1 %vm189_vm1, %v1096_v13  ;;  %v260_v31 = vadd.f32 %v217_v17, %v177_v27  ;;  %v261_v32 = vadd.f32 %v237_v16, %v177_v27  ;;  %v262_v40 = vadd.f32 %v257_v18, %v177_v27 }
  0xd5   : > { %1098 = vmatmul.msk.f32.vlgmr.msra.gmra.mxu0 %vm189_vm1, %v1096_v13  ;;  %1102 = vmatmul.msk.f32.vlgmr.msra.gmra.mxu2 %vm189_vm1, %v1096_v13 }
  0xfa   : > { %v346_v20 = vpop.f32.mrf.mxu1 }
  0xfb   : > { %v351_v45 = vadd.f32 %v346_v20, %v262_v40 }
 0x11a   : > { %v326_v21 = vpop.f32.mrf.mxu0 }
 0x11b   : > { %v350_v36 = vadd.f32 %v326_v21, %v261_v32 }
 0x120   : > { %v306_v19 = vpop.f32.mrf.mxu3 }
 0x121   : > { %v349_v33 = vadd.f32 %v306_v19, %v260_v31 }
 0x123   : > { %v435_v25 = vpop.f32.mrf.mxu0 }
 0x124   : > { %v484_v24 = vpop.f32.mrf.mxu1  ;;  %v440_v52 = vadd.f32 %v435_v25, %v351_v45 }
 0x128   : > { %v395_v22 = vpop.f32.mrf.mxu2  ;;  %v415_v23 = vpop.f32.mrf.mxu3 }
 0x129   : > { %v438_v39 = vadd.f32 %v395_v22, %v349_v33  ;;  %v439_v41 = vadd.f32 %v415_v23, %v350_v36 }
 0x12b   : > { %v527_v43 = vadd.f32 %v484_v24, %v438_v39 }
 0x12c   : > { %v593_v29 = vpop.f32.mrf.mxu1 }
 0x130   : > { %v504_v26 = vpop.f32.mrf.mxu2  ;;  %v524_v28 = vpop.f32.mrf.mxu3 }
 0x131   : > { %v528_v42 = vadd.f32 %v504_v26, %v439_v41  ;;  %v529_v54 = vadd.f32 %v524_v28, %v440_v52 }
 0x132   : > { %v573_v30 = vpop.f32.mrf.mxu0 }
 0x133   : > { %v616_v46 = vadd.f32 %v573_v30, %v527_v43  ;;  %v617_v50 = vadd.f32 %v593_v29, %v528_v42 }
 0x138   : > { %v613_v34 = vpop.f32.mrf.mxu2 }
 0x139   : > { %v618_v58 = vadd.f32 %v613_v34, %v529_v54 }
 0x140   : > { %v662_v35 = vpop.f32.mrf.mxu3 }
 0x141   : > { %v702_v37 = vpop.f32.mrf.mxu1  ;;  %v751_v44 = vpop.f32.mrf.mxu2  ;;  %v705_v51 = vadd.f32 %v662_v35, %v616_v46 }
 0x142   : > { %v682_v38 = vpop.f32.mrf.mxu0  ;;  %v707_v63 = vadd.f32 %v702_v37, %v618_v58 }
 0x143   : > { %v706_v53 = vadd.f32 %v682_v38, %v617_v50  ;;  %v794_v55 = vadd.f32 %v751_v44, %v705_v51 }
 0x148   : > { %v771_v48 = vpop.f32.mrf.mxu3 }
 0x149   : > { %v840_v47 = vpop.f32.mrf.mxu1  ;;  %v795_v56 = vadd.f32 %v771_v48, %v706_v53 }
 0x14a   : > { %v791_v49 = vpop.f32.mrf.mxu0  ;;  %v883_v59 = vadd.f32 %v840_v47, %v794_v55 }
 0x14b   : > { %v796_v3 = vadd.f32 %v791_v49, %v707_v63 }
 0x150   : > { %v860_v57 = vpop.f32.mrf.mxu2 }
 0x151   : > { %v884_v60 = vadd.f32 %v860_v57, %v795_v56  ;;  %v949_v61 = vpop.f32.mrf.mxu1  ;;  %v880_v2 = vpop.f32.mrf.mxu3 }
 0x152   : > { %v929_v62 = vpop.f32.mrf.mxu0  ;;  %v885_v4 = vadd.f32 %v880_v2, %v796_v3 }
 0x153   : > { %v972_v0 = vadd.f32 %v929_v62, %v883_v59  ;;  %v973_v1 = vadd.f32 %v949_v61, %v884_v60 }
 0x155   : > { %975 = vst [vmem:[%s170_s24] sm:$0xff] %v972_v0 }
 0x156   : > { %976 = vst [vmem:[%s170_s24 + $0x8] sm:$0xff] %v973_v1 }
 0x158   : > { %v969_v5 = vpop.f32.mrf.mxu2 }
 0x159   : > { %v974_v6 = vadd.f32 %v969_v5, %v885_v4 }
 0x15b   : > { %978 = vst.msk [vmem:[%s170_s24 + $0x10] sm:$0xff] %vm977_vm10, %v974_v6 }
 0x15c PF: > { %s13_s12 = sadd.s32 1, %s1131_s12  }
 0x15d   : > { %p10_p4 = scmp.ge.s32.totalorder %s13_s12, 4  }
 0x15f   :  { %12 = sbr.rel (!%p10_p4) target bundleno = 1 (0x1), region = 79 }

</bundles_post_ra>
